<compile_context>
chip_gen: v5e
topology: v5e:2x2
jax: 0.10.0
libtpu: 0.0.40
codegen_flags: <defaults>
</compile_context>

<pallas_src>
import jax
import jax.numpy as jnp
from jax.experimental import pallas as pl
from jax.experimental.pallas import tpu as pltpu

N_FEAT = 128  # hidden width of the attention MLP (hard-coded in the module)


def _round_up(x, m):
    return ((x + m - 1) // m) * m


def _attn_kernel(zs_ref, zt_ref, w1s_ref, w1t_ref, b1_ref, w2_ref, b2_ref,
                 zst_ref, w_ref):
    zs = zs_ref[...]                                   # [TB, L] f32
    zt = zt_ref[...]                                   # [TB, L] f32

    # First linear layer: concat(zs, zt) @ W1 == zs @ W1[:L] + zt @ W1[L:].
    # f32 operands (multi-pass MXU); compute is hidden under HBM DMA.
    h = jnp.dot(zs, w1s_ref[...], preferred_element_type=jnp.float32)
    h = h + jnp.dot(zt, w1t_ref[...], preferred_element_type=jnp.float32)
    h = jnp.maximum(h + b1_ref[...], 0.0)              # [TB, 128] f32

    # Second linear layer + sigmoid.
    logits = jnp.dot(h, w2_ref[...], preferred_element_type=jnp.float32)
    w = jax.nn.sigmoid(logits + b2_ref[...])           # [TB, L] f32

    # zst = (1 - w) * zs + w * (zs + zt) / 2  ==  zs + w * (zt - zs) / 2
    zst = zs + w * (zt - zs) * 0.5

    # Full-block stores (no split writes inside the tile).
    zst_ref[...] = zst.astype(zst_ref.dtype)
    w_ref[...] = w.astype(w_ref.dtype)


def _pick_tb(B, max_tb):
    """Largest multiple of 8 <= max_tb that divides B, keeping >= 2 grid steps
    when B >= 16 (so v7x megacore can shard the batch axis).
    Returns None if B is not a multiple of 8 (caller handles that case)."""
    if B % 8 != 0:
        return None
    if B < 16:
        return B
    cap = max(8, min(max_tb, B // 2))
    tb = 8
    t = 16
    while t <= cap:
        if B % t == 0:
            tb = t
        t += 8
    return tb


def prepare_params(params, latent_size):
    """One-time parameter prep (hoisted out of the per-call wrapper):
    split W1 into its zs / zt halves; keep everything f32."""
    L = latent_size
    w1, b1, w2, b2 = params["w1"], params["b1"], params["w2"], params["b2"]
    assert w1.shape == (2 * L, N_FEAT)
    assert w2.shape == (N_FEAT, L)
    return {
        "w1s": w1[:L],                   # [L, 128]
        "w1t": w1[L:],                   # [L, 128]
        "b1": b1.reshape(1, N_FEAT),     # [1, 128]
        "w2": w2,                        # [128, L]
        "b2": b2.reshape(1, L),          # [1, L]
    }


def attention_net_sample(zs, zt, prepared, *, max_tb=2048):
    """Pallas wrapper. zs, zt: [B, L] float32. `prepared` comes from
    prepare_params(). Returns dict {'zst': [B, L], 'w': [B, L]}."""
    B, L = zs.shape
    w1s, w1t = prepared["w1s"], prepared["w1t"]
    b1, w2, b2 = prepared["b1"], prepared["w2"], prepared["b2"]
    assert w1s.shape == (L, N_FEAT) and w1t.shape == (L, N_FEAT)
    assert w2.shape == (N_FEAT, L)

    TB = _pick_tb(B, max_tb)
    if TB is None:
        if B <= max_tb:
            # Small / ragged batch: one block covering the whole batch
            # (block_shape equal to full array dims is always legal) ->
            # no padding, no post-kernel slice.
            TB, Bp = B, B
            zs_p, zt_p = zs, zt
        else:
            # Rare fallback: huge batch that is not a multiple of 8.
            Bp = _round_up(B, 8)
            pad = ((0, Bp - B), (0, 0))
            zs_p, zt_p = jnp.pad(zs, pad), jnp.pad(zt, pad)
            TB = _pick_tb(Bp, max_tb)
    else:
        Bp = B
        zs_p, zt_p = zs, zt

    grid = (Bp // TB,)
    act_spec = lambda: pl.BlockSpec((TB, L), lambda i: (i, 0))
    # Constant index_map -> block stays VMEM-resident across grid steps
    # (weights/biases are not re-DMA'd per step).
    const_spec = lambda shape: pl.BlockSpec(shape, lambda i: (0, 0))

    # VMEM budget from the actual footprint (double-buffered activation /
    # output tiles + resident weights), capped at 48 MiB so the same tiles
    # also fit v7x's 64 MiB physical VMEM.
    io_tile_bytes = 4 * TB * L * 4                       # zs, zt, zst, w tiles
    weight_bytes = (2 * L * N_FEAT + N_FEAT + N_FEAT * L + L) * 4
    vmem_limit = int(min(max(2 * io_tile_bytes + weight_bytes + (4 << 20),
                             16 << 20), 48 << 20))

    zst, w = pl.pallas_call(
        _attn_kernel,
        out_shape=(jax.ShapeDtypeStruct((Bp, L), jnp.float32),
                   jax.ShapeDtypeStruct((Bp, L), jnp.float32)),
        grid=grid,
        in_specs=[
            act_spec(),                    # zs   [TB, L]
            act_spec(),                    # zt   [TB, L]
            const_spec((L, N_FEAT)),       # W1 (zs half)
            const_spec((L, N_FEAT)),       # W1 (zt half)
            const_spec((1, N_FEAT)),       # b1
            const_spec((N_FEAT, L)),       # W2
            const_spec((1, L)),            # b2
        ],
        out_specs=(pl.BlockSpec((TB, L), lambda i: (i, 0)),
                   pl.BlockSpec((TB, L), lambda i: (i, 0))),
        compiler_params=pltpu.CompilerParams(
            dimension_semantics=("parallel",),
            vmem_limit_bytes=vmem_limit,
        ),
    )(zs_p, zt_p, w1s, w1t, b1, w2, b2)

    if Bp != B:
        zst, w = zst[:B], w[:B]
    return {"zst": zst, "w": w}


def init_params(key, latent_size):
    """Deterministic parameter init (PyTorch-Linear-style uniform fan-in)."""
    k1, k2, k3, k4 = jax.random.split(key, 4)
    fan1 = 2 * latent_size
    fan2 = N_FEAT
    lim1 = 1.0 / jnp.sqrt(fan1)
    lim2 = 1.0 / jnp.sqrt(fan2)
    # Stored as [in, out] (transposed relative to torch.nn.Linear.weight).
    w1 = jax.random.uniform(k1, (2 * latent_size, N_FEAT), jnp.float32, -lim1, lim1)
    b1 = jax.random.uniform(k2, (1, N_FEAT), jnp.float32, -lim1, lim1)
    w2 = jax.random.uniform(k3, (N_FEAT, latent_size), jnp.float32, -lim2, lim2)
    b2 = jax.random.uniform(k4, (1, latent_size), jnp.float32, -lim2, lim2)
    return {"w1": w1, "b1": b1, "w2": w2, "b2": b2}


def _reference(zs, zt, params):
    """Pure-JAX f32 reference for correctness check."""
    x = jnp.concatenate([zs, zt], axis=1)
    h = jnp.maximum(x @ params["w1"] + params["b1"], 0.0)
    w = jax.nn.sigmoid(h @ params["w2"] + params["b2"])
    zst = (1.0 - w) * zs + w * (zs + zt) / 2.0
    return zst, w


if __name__ == "__main__":
    key = jax.random.PRNGKey(0)
    kp, ks, kt = jax.random.split(key, 3)

    batch = 2
    latent_size = 32

    params = init_params(kp, latent_size)
    prepared = prepare_params(params, latent_size)   # one-time weight split

    zs = jax.random.normal(ks, (batch, latent_size), jnp.float32)
    zt = jax.random.normal(kt, (batch, latent_size), jnp.float32)

    out = attention_net_sample(zs, zt, prepared)
    jax.block_until_ready(out)

    zst_ref, w_ref = _reference(zs, zt, params)
    assert out["zst"].shape == (batch, latent_size)
    assert out["w"].shape == (batch, latent_size)
    assert jnp.allclose(out["zst"], zst_ref, atol=1e-2, rtol=1e-2)
    assert jnp.allclose(out["w"], w_ref, atol=1e-2, rtol=1e-2)

    print("KERNEL_OK")
</pallas_src>

<mosaic_0001>
module attributes {stable_mosaic.version = 11 : i64} {
  func.func @_attn_kernel(%arg0: i32, %arg1: memref<2x32xf32, #tpu.memory_space<vmem>>, %arg2: memref<2x32xf32, #tpu.memory_space<vmem>>, %arg3: memref<32x128xf32, #tpu.memory_space<vmem>>, %arg4: memref<32x128xf32, #tpu.memory_space<vmem>>, %arg5: memref<1x128xf32, #tpu.memory_space<vmem>>, %arg6: memref<128x32xf32, #tpu.memory_space<vmem>>, %arg7: memref<1x32xf32, #tpu.memory_space<vmem>>, %arg8: memref<2x32xf32, #tpu.memory_space<vmem>>, %arg9: memref<2x32xf32, #tpu.memory_space<vmem>>) attributes {dimension_semantics = [#tpu.dimension_semantics<parallel>], iteration_bounds = array<i64: 1>, scalar_prefetch = 0 : i64, scratch_operands = 0 : i64, tpu.core_type = #tpu.core_type<tc>, window_params = [{transform_indices = @transform_0, window_bounds = array<i64: 2, 32>}, {transform_indices = @transform_1, window_bounds = array<i64: 2, 32>}, {pipeline_mode = #tpu.pipeline_mode<synchronous>, transform_indices = @transform_2, window_bounds = array<i64: 32, 128>}, {pipeline_mode = #tpu.pipeline_mode<synchronous>, transform_indices = @transform_3, window_bounds = array<i64: 32, 128>}, {pipeline_mode = #tpu.pipeline_mode<synchronous>, transform_indices = @transform_4, window_bounds = array<i64: 1, 128>}, {pipeline_mode = #tpu.pipeline_mode<synchronous>, transform_indices = @transform_5, window_bounds = array<i64: 128, 32>}, {pipeline_mode = #tpu.pipeline_mode<synchronous>, transform_indices = @transform_6, window_bounds = array<i64: 1, 32>}, {transform_indices = @transform_7, window_bounds = array<i64: 2, 32>}, {transform_indices = @transform_8, window_bounds = array<i64: 2, 32>}]} {
    %c0 = arith.constant 0 : index
    %c0_0 = arith.constant 0 : index
    %0 = vector.load %arg1[%c0, %c0_0] : memref<2x32xf32, #tpu.memory_space<vmem>>, vector<2x32xf32>
    %c0_1 = arith.constant 0 : index
    %c0_2 = arith.constant 0 : index
    %1 = vector.load %arg2[%c0_1, %c0_2] : memref<2x32xf32, #tpu.memory_space<vmem>>, vector<2x32xf32>
    %c0_3 = arith.constant 0 : index
    %c0_4 = arith.constant 0 : index
    %2 = vector.load %arg3[%c0_3, %c0_4] : memref<32x128xf32, #tpu.memory_space<vmem>>, vector<32x128xf32>
    %cst = arith.constant dense<0.000000e+00> : vector<2x128xf32>
    %3 = tpu.matmul %0, %2, %cst {dimension_numbers = #tpu.dot_dimension_numbers<[1], [0], [0], [1], [0, 0, 1, 1], [], []>} : vector<2x32xf32>, vector<32x128xf32>, vector<2x128xf32> -> vector<2x128xf32>
    %c0_5 = arith.constant 0 : index
    %c0_6 = arith.constant 0 : index
    %4 = vector.load %arg4[%c0_5, %c0_6] : memref<32x128xf32, #tpu.memory_space<vmem>>, vector<32x128xf32>
    %cst_7 = arith.constant dense<0.000000e+00> : vector<2x128xf32>
    %5 = tpu.matmul %1, %4, %cst_7 {dimension_numbers = #tpu.dot_dimension_numbers<[1], [0], [0], [1], [0, 0, 1, 1], [], []>} : vector<2x32xf32>, vector<32x128xf32>, vector<2x128xf32> -> vector<2x128xf32>
    %6 = arith.addf %3, %5 : vector<2x128xf32>
    %c0_8 = arith.constant 0 : index
    %c0_9 = arith.constant 0 : index
    %7 = vector.load %arg5[%c0_8, %c0_9] : memref<1x128xf32, #tpu.memory_space<vmem>>, vector<1x128xf32>
    %8 = vector.broadcast %7 : vector<1x128xf32> to vector<2x128xf32>
    %9 = arith.addf %6, %8 : vector<2x128xf32>
    %cst_10 = arith.constant 0.000000e+00 : f32
    %10 = vector.broadcast %cst_10 : f32 to vector<2x128xf32>
    %11 = arith.maximumf %9, %10 : vector<2x128xf32>
    %c0_11 = arith.constant 0 : index
    %c0_12 = arith.constant 0 : index
    %12 = vector.load %arg6[%c0_11, %c0_12] : memref<128x32xf32, #tpu.memory_space<vmem>>, vector<128x32xf32>
    %cst_13 = arith.constant dense<0.000000e+00> : vector<2x32xf32>
    %13 = tpu.matmul %11, %12, %cst_13 {dimension_numbers = #tpu.dot_dimension_numbers<[1], [0], [0], [1], [0, 0, 1, 1], [], []>} : vector<2x128xf32>, vector<128x32xf32>, vector<2x32xf32> -> vector<2x32xf32>
    %c0_14 = arith.constant 0 : index
    %c0_15 = arith.constant 0 : index
    %14 = vector.load %arg7[%c0_14, %c0_15] : memref<1x32xf32, #tpu.memory_space<vmem>>, vector<1x32xf32>
    %15 = vector.broadcast %14 : vector<1x32xf32> to vector<2x32xf32>
    %16 = arith.addf %13, %15 : vector<2x32xf32>
    %17 = arith.negf %16 : vector<2x32xf32>
    %18 = math.exp %17 : vector<2x32xf32>
    %cst_16 = arith.constant 1.000000e+00 : f32
    %19 = vector.broadcast %cst_16 : f32 to vector<2x32xf32>
    %20 = arith.addf %19, %18 : vector<2x32xf32>
    %21 = arith.divf %19, %20 : vector<2x32xf32>
    %22 = arith.subf %1, %0 : vector<2x32xf32>
    %23 = arith.mulf %21, %22 : vector<2x32xf32>
    %cst_17 = arith.constant 5.000000e-01 : f32
    %24 = vector.broadcast %cst_17 : f32 to vector<2x32xf32>
    %25 = arith.mulf %23, %24 : vector<2x32xf32>
    %26 = arith.addf %0, %25 : vector<2x32xf32>
    %c0_18 = arith.constant 0 : index
    %c0_19 = arith.constant 0 : index
    %27 = vector.load %arg8[%c0_18, %c0_19] : memref<2x32xf32, #tpu.memory_space<vmem>>, vector<2x32xf32>
    tpu.vector_store %arg8[%c0_18, %c0_19], %26 {strides = array<i32>} : memref<2x32xf32, #tpu.memory_space<vmem>>, vector<2x32xf32>,
    %c0_20 = arith.constant 0 : index
    %c0_21 = arith.constant 0 : index
    %28 = vector.load %arg9[%c0_20, %c0_21] : memref<2x32xf32, #tpu.memory_space<vmem>>, vector<2x32xf32>
    tpu.vector_store %arg9[%c0_20, %c0_21], %21 {strides = array<i32>} : memref<2x32xf32, #tpu.memory_space<vmem>>, vector<2x32xf32>,
    return
  }
  func.func @transform_0(%arg0: i32) -> (i32, i32) {
    %c0_i32 = arith.constant 0 : i32
    %c0_i32_0 = arith.constant 0 : i32
    return %arg0, %c0_i32 : i32, i32
  }
  func.func @transform_1(%arg0: i32) -> (i32, i32) {
    %c0_i32 = arith.constant 0 : i32
    %c0_i32_0 = arith.constant 0 : i32
    return %arg0, %c0_i32 : i32, i32
  }
  func.func @transform_2(%arg0: i32) -> (i32, i32) {
    %c0_i32 = arith.constant 0 : i32
    %c0_i32_0 = arith.constant 0 : i32
    %c0_i32_1 = arith.constant 0 : i32
    return %c0_i32, %c0_i32_0 : i32, i32
  }
  func.func @transform_3(%arg0: i32) -> (i32, i32) {
    %c0_i32 = arith.constant 0 : i32
    %c0_i32_0 = arith.constant 0 : i32
    %c0_i32_1 = arith.constant 0 : i32
    return %c0_i32, %c0_i32_0 : i32, i32
  }
  func.func @transform_4(%arg0: i32) -> (i32, i32) {
    %c0_i32 = arith.constant 0 : i32
    %c0_i32_0 = arith.constant 0 : i32
    %c0_i32_1 = arith.constant 0 : i32
    return %c0_i32, %c0_i32_0 : i32, i32
  }
  func.func @transform_5(%arg0: i32) -> (i32, i32) {
    %c0_i32 = arith.constant 0 : i32
    %c0_i32_0 = arith.constant 0 : i32
    %c0_i32_1 = arith.constant 0 : i32
    return %c0_i32, %c0_i32_0 : i32, i32
  }
  func.func @transform_6(%arg0: i32) -> (i32, i32) {
    %c0_i32 = arith.constant 0 : i32
    %c0_i32_0 = arith.constant 0 : i32
    %c0_i32_1 = arith.constant 0 : i32
    return %c0_i32, %c0_i32_0 : i32, i32
  }
  func.func @transform_7(%arg0: i32) -> (i32, i32) {
    %c0_i32 = arith.constant 0 : i32
    %c0_i32_0 = arith.constant 0 : i32
    return %arg0, %c0_i32 : i32, i32
  }
  func.func @transform_8(%arg0: i32) -> (i32, i32) {
    %c0_i32 = arith.constant 0 : i32
    %c0_i32_0 = arith.constant 0 : i32
    return %arg0, %c0_i32 : i32, i32
  }
}

</mosaic_0001>

<bundles_post_ra>
// kernel: tpu_custom_call.1
= control target key start
LH: loop header
LB: loop body
LE: loop exit
PB: predicated region body
PF: predicated region fallthrough
CT: control target
= control target key end

     0   :  { %14 = vsyncpa [#allocation3], 0  ;;  %vm40_vm0 = vcmask 261120   ;;  %s402_s0 = inlined_call_operand.vmem [shape: f32[2,32], index: 0, kind: input, shape index: {}]   ;;  %s403_s1 = inlined_call_operand.vmem [shape: f32[2,32], index: 1, kind: input, shape index: {}]   ;;  %s404_s2 = inlined_call_operand.vmem [shape: f32[32,128], index: 2, kind: input, shape index: {}]   ;;  %s405_s3 = inlined_call_operand.vmem [shape: f32[32,128], index: 3, kind: input, shape index: {}]   ;;  %s406_s4 = inlined_call_operand.vmem [shape: f32[1,128], index: 4, kind: input, shape index: {}]   ;;  %s407_s5 = inlined_call_operand.vmem [shape: f32[128,32], index: 5, kind: input, shape index: {}]   ;;  %s408_s6 = inlined_call_operand.vmem [shape: f32[1,32], index: 6, kind: input, shape index: {}]   ;;  %s409_s7 = inlined_call_operand.hbm [shape: f32[2,32], index: 7, kind: output, shape index: {0}]   ;;  %s410_s8 = inlined_call_operand.hbm [shape: f32[2,32], index: 8, kind: output, shape index: {1}]  }
   0x1   :  { %v39_v0 = vld [vmem:[%s405_s3 + $0x18] sm:$0xff]  ;;  %v38_v2 = vld [vmem:[%s405_s3 + $0x10] sm:$0xff]  ;;  %v37_v4 = vld [vmem:[%s405_s3 + $0x8] sm:$0xff] }
   0x2   :  { %v35_v1 = vld [vmem:[%s404_s2 + $0x18] sm:$0xff]  ;;  %56 = vmatpush.msra.mxu0 %v39_v0  ;;  %v34_v3 = vld [vmem:[%s404_s2 + $0x10] sm:$0xff]  ;;  %v33_v5 = vld [vmem:[%s404_s2 + $0x8] sm:$0xff] }
   0x3   :  { %79 = vmatpush.msra.mxu1 %v35_v1  ;;  %v108_v6 = vld [vmem:[%s407_s5 + $0x78] sm:$0xff]  ;;  %v107_v7 = vld [vmem:[%s407_s5 + $0x70] sm:$0xff]  ;;  %v36_v8 = vld [vmem:[%s405_s3] sm:$0xff] }
   0x4   :  { %57 = vmatpush.msra.mxu0 %v38_v2  ;;  %v32_v9 = vld [vmem:[%s404_s2] sm:$0xff]  ;;  %113 = vmatpush.msra.mxu2 %v108_v6  ;;  %v106_v12 = vld [vmem:[%s407_s5 + $0x68] sm:$0xff] }
   0x5   :  { %80 = vmatpush.msra.mxu1 %v34_v3  ;;  %v334_v10 = vld [vmem:[%s403_s1] sm:$0x3] }
   0x6   :  { %58 = vmatpush.msra.mxu0 %v37_v4  ;;  %v339_v11 = vld [vmem:[%s402_s0] sm:$0x3]  ;;  %114 = vmatpush.msra.mxu2 %v107_v7 }
   0x7   :  { %81 = vmatpush.msra.mxu1 %v33_v5  ;;  %v105_v13 = vld [vmem:[%s407_s5 + $0x60] sm:$0xff] }
   0x8   :  { %59 = vmatpush.msra.mxu0 %v36_v8 }
   0x9   :  { %82 = vmatpush.msra.mxu1 %v32_v9  ;;  %191 = vmatmul.msk.f32.vlgmr.msra.gmra.mxu0 %vm40_vm0, %v334_v10 }
   0xa   :  { %192 = vmatmul.msk.f32.vlgmr.msra.gmra.mxu1 %vm40_vm0, %v339_v11 }
   0xb   :  { %15 = vsyncpa [#allocation5], 0  ;;  %115 = vmatpush.msra.mxu2 %v106_v12  ;;  %v104_v14 = vld [vmem:[%s407_s5 + $0x58] sm:$0xff]  ;;  %v103_v15 = vld [vmem:[%s407_s5 + $0x50] sm:$0xff]  ;;  %v152_v44 = vsub.f32 %v334_v10, %v339_v11  ;;  %vm156_vm4 = vcmask 254976   ;;  %s255_s11 = smov [#allocation2]  }
   0xc   :  { %v102_v16 = vld [vmem:[%s407_s5 + $0x48] sm:$0xff]  ;;  %v101_v17 = vld [vmem:[%s407_s5 + $0x40] sm:$0xff]  ;;  %v100_v18 = vld [vmem:[%s407_s5 + $0x38] sm:$0xff]  ;;  %s164_s12 = sshll.u32 %s255_s11, 4  ;;  %s165_s12 = int_to_ptr.vmem [resolvable:$true] %s164_s12 }
   0xd   :  { %116 = vmatpush.msra.mxu2 %v105_v13  ;;  %v99_v19 = vld [vmem:[%s407_s5 + $0x30] sm:$0xff]  ;;  %v98_v20 = vld [vmem:[%s407_s5 + $0x28] sm:$0xff]  ;;  %v97_v21 = vld [vmem:[%s407_s5 + $0x20] sm:$0xff] }
   0xe   :  { %v96_v22 = vld [vmem:[%s407_s5 + $0x18] sm:$0xff]  ;;  %v95_v23 = vld [vmem:[%s407_s5 + $0x10] sm:$0xff]  ;;  %v94_v24 = vld [vmem:[%s407_s5 + $0x8] sm:$0xff] }
   0xf   :  { %117 = vmatpush.msra.mxu2 %v104_v14  ;;  %v93_v25 = vld [vmem:[%s407_s5] sm:$0xff] }
  0x10   :  { %v196_v26 = vld [vmem:[%s406_s4] ss:$0 sm:$0xff]  ;;  %s254_s4 = smov [#allocation4]  }
  0x11   :  { %118 = vmatpush.msra.mxu2 %v103_v15  ;;  %v197_v32 = vld [vmem:[%s408_s6] ss:$0 sm:$0xff]  ;;  %s175_s5 = sshll.u32 %s254_s4, 4  ;;  %s177_s6 = sshll.u32 %s410_s8, 4  ;;  %s176_s5 = int_to_ptr.vmem [resolvable:$true] %s175_s5  ;;  %s178_s6 = int_to_ptr.hbm [resolvable:$true] %s177_s6 }
  0x12   :  { %s166_s8 = sshll.u32 %s409_s7, 4  ;;  %s167_s8 = int_to_ptr.hbm [resolvable:$true] %s166_s8 }
  0x13   :  { %119 = vmatpush.msra.mxu2 %v102_v16 }
  0x15   :  { %120 = vmatpush.msra.mxu2 %v101_v17 }
  0x17   :  { %121 = vmatpush.msra.mxu2 %v100_v18 }
  0x19   :  { %122 = vmatpush.msra.mxu2 %v99_v19 }
  0x1b   :  { %123 = vmatpush.msra.mxu2 %v98_v20 }
  0x1d   :  { %124 = vmatpush.msra.mxu2 %v97_v21 }
  0x1f   :  { %125 = vmatpush.msra.mxu2 %v96_v22 }
  0x21   :  { %126 = vmatpush.msra.mxu2 %v95_v23 }
  0x23   :  { %127 = vmatpush.msra.mxu2 %v94_v24 }
  0x25   :  { %128 = vmatpush.msra.mxu2 %v93_v25 }
  0x86   :  { %v61_v27 = vpop.f32.mrf.mxu0 }
  0x87   :  { %v84_v28 = vpop.f32.mrf.mxu1 }
  0x88   :  { %v85_v29 = vadd.f32 %v84_v28, %v61_v27 }
  0x8a   :  { %v91_v30 = vadd.f32 %v196_v26, %v85_v29 }
  0x8c   :  { %v92_v31 = vmax.f32 %v91_v30, 0.0 }
  0x8e   :  { %129 = vmatmul.f32.vlgmr.msra.gmra.mxu2 %v92_v31 }
 0x111   :  { %v130_v33 = vpop.f32.mrf.mxu2 }
 0x112   :  { %v131_v34 = vadd.f32 %v197_v32, %v130_v33 }
 0x114   :  { %v193_v35 = vmul.f32 -1.442695, %v131_v34 }
 0x116   :  { %198 = vpow2.f32 %v193_v35 }
 0x11c   :  { %v199_v36 = vpop.eup %198 }
 0x11d   :  { %v136_v37 = vadd.f32 1.0, %v199_v36 }
 0x11f   :  { %200 = vrcp.f32 %v136_v37  ;;  %v148_v41 = vand.u32 2147483648, %v136_v37  ;;  %v146_v43 = vand.u32 2147483647, %v136_v37  ;;  %vm142_vm2 = vweird.f32 %v136_v37 }
 0x121   :  { %v149_v46 = vor.u32 1.1754944e-38, %v148_v41  ;;  %vm147_vm5 = vcmp.eq.f32.partialorder %v146_v43, 8.507059e+37 }
 0x125   :  { %v201_v38 = vpop.eup %200 }
 0x126   :  { %v138_v39 = vmul.f32 %v201_v38, %v136_v37  ;;  %vm143_vm1 = vweird.f32 %v201_v38 }
 0x127   :  { %vm144_vm3 = vmor %vm142_vm2, %vm143_vm1 }
 0x128   :  { %v139_v40 = vsub.f32 1.0, %v138_v39 }
 0x12a   :  { %v140_v42 = vmul.f32 %v201_v38, %v139_v40 }
 0x12c   :  { %v141_v45 = vadd.f32 %v201_v38, %v140_v42 }
 0x12e   :  { %v145_v47 = vsel %vm144_vm3, %v201_v38, %v141_v45 }
 0x12f   :  { %v150_v48 = vsel %vm147_vm5, %v149_v46, %v145_v47 }
 0x130   :  { %v153_v49 = vmul.f32 %v152_v44, %v150_v48  ;;  %158 = vst.msk [vmem:[#allocation4] sm:$0x3] %vm156_vm4, %v150_v48 }
 0x131   :  { %180 = dma.vmem_to_hbm [thread:$0]  %s176_s5, 32, %s178_s6, [#allocation5]  }
 0x132   :  { %v154_v50 = vmul.f32 0.5, %v153_v49 }
 0x134   :  { %v155_v51 = vadd.f32 %v154_v50, %v339_v11 }
 0x136   :  { %157 = vst.msk [vmem:[#allocation2] sm:$0x3] %vm156_vm4, %v155_v51 }
 0x137   :  { %169 = dma.vmem_to_hbm [thread:$0]  %s165_s12, 32, %s167_s8, [#allocation3]  }
 0x138   :  { %250 = dma.done.wait [#allocation3], 32  }
 0x139   :  { %251 = vsyncadd [#allocation3], 4294967264 }
 0x13a   :  { %252 = dma.done.wait [#allocation5], 32  }
 0x13b   :  { %253 = vsyncadd [#allocation5], 4294967264 }
 0x13c   :  { %189 = vsyncpa [#allocation3], 1 }
 0x13d   :  { %190 = vsyncpa [#allocation5], 1 }

</bundles_post_ra>
